<compile_context>
chip_gen: v7x
topology: tpu7x:2x2x1
jax: 0.10.0
libtpu: 0.0.40
codegen_flags: <defaults>
</compile_context>

<pallas_src>
import functools
import math

import jax
import jax.numpy as jnp
from jax.experimental import pallas as pl
from jax.experimental.pallas import tpu as pltpu


def hop_attention_kernel(inp_ref, waug_ref, adj_ref, out_ref, *,
                         alpha: float, concat: bool, f_out: int, n: int, bt: int):
    """One block of `bt` graphs per grid step.

    Shapes seen by the kernel:
      inp_ref  (bt*n, f_in)      f32
      waug_ref (f_in, f_out + 2) f32   -- [W | W @ a_src | W @ a_dst]
      adj_ref  (bt, n, n)        f32
      out_ref  (bt, n, f_out)    f32
    """
    # Single MXU call for the whole block: h_aug = inp @ [W | W a_src | W a_dst].
    h_aug = jnp.dot(inp_ref[...], waug_ref[...],
                    preferred_element_type=jnp.float32)        # (bt*n, f_out+2)

    # Per-graph (N, N) stages; bt is small and static -> unrolled 2-D ops.
    for b in range(bt):
        rows = slice(b * n, (b + 1) * n)
        h = h_aug[rows, :f_out]                                # (n, f_out)
        el = h_aug[rows, f_out:f_out + 1]                      # (n, 1) = h @ a_src
        er = h_aug[rows, f_out + 1:f_out + 2]                  # (n, 1) = h @ a_dst

        # e[i, j] = leakyrelu( h[i]·a_src + h[j]·a_dst )        (n, n)
        e = el + er.T
        e = jnp.where(e > 0, e, alpha * e)                     # LeakyReLU(alpha)

        # Mask by adjacency with -1e12 (matches the torch constant); scalar constant,
        # no (n, n) splat materialized.
        logits = jnp.where(adj_ref[b] > 0, e, -1.0e12)

        # Row softmax (dim=1).
        m = jnp.max(logits, axis=1, keepdims=True)
        ex = jnp.exp(logits - m)
        denom = jnp.sum(ex, axis=1, keepdims=True)
        # EUP approximate reciprocal + one Newton-Raphson step (error ~1e-7, well
        # inside the 1e-4 tolerance) keeps the divide off the VALU slot.
        r = pl.reciprocal(denom, approx=True)
        r = r * (2.0 - denom * r)
        attn = ex * r

        # Dropout on `attn` is identity in eval mode.

        # h' = attention @ h                                    (n, f_out)
        h_prime = jnp.dot(attn, h, preferred_element_type=jnp.float32)

        if concat:
            # ELU (alpha = 1.0). Clamp the exp argument so the unselected branch never infs.
            h_prime = jnp.where(h_prime > 0, h_prime,
                                jnp.exp(jnp.minimum(h_prime, 0.0)) - 1.0)

        out_ref[b, :, :] = h_prime.astype(out_ref.dtype)


def hop_attention_forward_batched(inp, w, a, adj, *, alpha: float, concat: bool = True,
                                  grid_steps: int | None = None):
    """Batched forward: one pallas_call, at most 2 grid steps (v7x megacore).

    inp : (B, N, F_in) f32
    w   : (F_in, F_out) f32
    a   : (2*F_out, 1) f32 (PyTorch layout)
    adj : (B, N, N), edges where adj > 0
    """
    b_sz, n, f_in = inp.shape
    f_out = w.shape[1]

    # Lane-dense attention vector (F_out, 2), folded into the weight matmul:
    # w_aug = [W | W @ a_src | W @ a_dst], shape (F_in, F_out + 2). The two extra
    # columns ride in lanes that are already padding at F_out=32.
    a2 = a.reshape(2, f_out).T
    w_aug = jnp.concatenate([w, w @ a2], axis=1)

    # Grid: 2 steps when the batch splits evenly (so v7x's 2 TensorCores both get work),
    # otherwise a single step. Each step handles bt graphs.
    if grid_steps is None:
        grid_steps = 2 if (b_sz >= 2 and b_sz % 2 == 0) else 1
    assert b_sz % grid_steps == 0, "batch must divide the number of grid steps"
    bt = b_sz // grid_steps

    # Node-major slab so the projection is one big-row MXU matmul per grid step.
    inp2d = inp.reshape(b_sz * n, f_in)
    adj = adj.astype(jnp.float32)

    kernel = functools.partial(hop_attention_kernel, alpha=alpha, concat=concat,
                               f_out=f_out, n=n, bt=bt)

    return pl.pallas_call(
        kernel,
        out_shape=jax.ShapeDtypeStruct((b_sz, n, f_out), jnp.float32),
        grid=(grid_steps,),
        in_specs=[
            pl.BlockSpec((bt * n, f_in), lambda g: (g, 0)),       # inp rows of this block
            pl.BlockSpec((f_in, f_out + 2), lambda g: (0, 0)),    # w_aug (shared)
            pl.BlockSpec((bt, n, n), lambda g: (g, 0, 0)),        # adj block
        ],
        out_specs=pl.BlockSpec((bt, n, f_out), lambda g: (g, 0, 0)),
        compiler_params=pltpu.CompilerParams(
            dimension_semantics=("parallel",)),                   # megacore-shardable
    )(inp2d, w_aug, adj)


def hop_attention_forward(inp, w, a, adj, *, alpha: float, concat: bool = True):
    """Single-graph forward matching the PyTorch module signature."""
    out = hop_attention_forward_batched(inp[None], w, a, adj[None],
                                        alpha=alpha, concat=concat)
    return out[0]


def xavier_uniform(key, shape, gain):
    # PyTorch xavier_uniform_ for a 2-D tensor: fan_in = shape[1], fan_out = shape[0].
    fan_out, fan_in = shape[0], shape[1]
    bound = gain * math.sqrt(6.0 / (fan_in + fan_out))
    return jax.random.uniform(key, shape, jnp.float32, minval=-bound, maxval=bound)


def reference_forward(inp, w, a, adj, *, alpha, concat=True):
    # Pure-JAX reference mirroring the PyTorch forward (eval mode), single graph.
    h = inp @ w
    f_out = w.shape[1]
    el = h @ a[:f_out, :]
    er = h @ a[f_out:, :]
    e = el + er.T
    e = jnp.where(e > 0, e, alpha * e)
    logits = jnp.where(adj > 0, e, jnp.full_like(e, -1.0e12))
    attn = jax.nn.softmax(logits, axis=1)
    h_prime = attn @ h
    return jax.nn.elu(h_prime) if concat else h_prime


if __name__ == "__main__":
    # Module hyperparameters (small, consistent with the PyTorch __init__).
    B = 4                # number of graphs batched into one pallas_call
    N = 8                # number of graph nodes
    in_features = 16
    out_features = 32
    dropout = 0.5        # eval mode -> identity
    alpha = 0.2          # LeakyReLU slope
    hop_num = 3          # unused for the output (dead code in the torch forward)
    hop_alpha = 0.1
    concat = True

    key = jax.random.PRNGKey(0)
    k_inp, k_adj, k_w, k_a = jax.random.split(key, 4)

    inp = jax.random.normal(k_inp, (B, N, in_features), jnp.float32)
    # Random binary adjacency with self-loops, per graph.
    adj = (jax.random.uniform(k_adj, (B, N, N)) > 0.5).astype(jnp.float32)
    adj = jnp.maximum(adj, jnp.broadcast_to(jnp.eye(N, dtype=jnp.float32), (B, N, N)))

    gain = 1.414
    w = xavier_uniform(k_w, (in_features, out_features), gain)
    a = xavier_uniform(k_a, (2 * out_features, 1), gain)

    # Batched kernel call: 2 grid steps x 2 graphs (both v7x TCs busy; 1 TC elsewhere).
    out = hop_attention_forward_batched(inp, w, a, adj, alpha=alpha, concat=concat)
    out = jax.block_until_ready(out)
    assert out.shape == (B, N, out_features)

    ref = jax.vmap(
        lambda x, m: reference_forward(x, w, a, m, alpha=alpha, concat=concat)
    )(inp, adj)
    assert jnp.allclose(out, ref, atol=1e-4, rtol=1e-4), "batched mismatch vs reference"

    # Single-graph path (original module signature).
    out0 = hop_attention_forward(inp[0], w, a, adj[0], alpha=alpha, concat=concat)
    out0 = jax.block_until_ready(out0)
    ref0 = reference_forward(inp[0], w, a, adj[0], alpha=alpha, concat=concat)
    assert out0.shape == (N, out_features)
    assert jnp.allclose(out0, ref0, atol=1e-4, rtol=1e-4), "single-graph mismatch vs reference"

    print("KERNEL_OK")
</pallas_src>

<mosaic_0001>
module attributes {stable_mosaic.version = 11 : i64} {
  func.func @hop_attention_kernel(%arg0: i32, %arg1: memref<16x16xf32, #tpu.memory_space<vmem>>, %arg2: memref<16x34xf32, #tpu.memory_space<vmem>>, %arg3: memref<2x8x8xf32, #tpu.memory_space<vmem>>, %arg4: memref<2x8x32xf32, #tpu.memory_space<vmem>>) attributes {dimension_semantics = [#tpu.dimension_semantics<parallel>], iteration_bounds = array<i64: 2>, scalar_prefetch = 0 : i64, scratch_operands = 0 : i64, tpu.core_type = #tpu.core_type<tc>, window_params = [{transform_indices = @transform_0, window_bounds = array<i64: 16, 16>}, {pipeline_mode = #tpu.pipeline_mode<synchronous>, transform_indices = @transform_1, window_bounds = array<i64: 16, 34>}, {transform_indices = @transform_2, window_bounds = array<i64: 2, 8, 8>}, {transform_indices = @transform_3, window_bounds = array<i64: 2, 8, 32>}]} {
    %c0 = arith.constant 0 : index
    %c0_0 = arith.constant 0 : index
    %0 = vector.load %arg1[%c0, %c0_0] : memref<16x16xf32, #tpu.memory_space<vmem>>, vector<16x16xf32>
    %c0_1 = arith.constant 0 : index
    %c0_2 = arith.constant 0 : index
    %1 = vector.load %arg2[%c0_1, %c0_2] : memref<16x34xf32, #tpu.memory_space<vmem>>, vector<16x34xf32>
    %cst = arith.constant dense<0.000000e+00> : vector<16x34xf32>
    %2 = tpu.matmul %0, %1, %cst {dimension_numbers = #tpu.dot_dimension_numbers<[1], [0], [0], [1], [0, 0, 1, 1], [], []>} : vector<16x16xf32>, vector<16x34xf32>, vector<16x34xf32> -> vector<16x34xf32>
    %3 = vector.extract_strided_slice %2 {offsets = [0, 0], sizes = [8, 32], strides = [1, 1]} : vector<16x34xf32> to vector<8x32xf32>
    %4 = vector.extract_strided_slice %2 {offsets = [0, 32], sizes = [8, 1], strides = [1, 1]} : vector<16x34xf32> to vector<8x1xf32>
    %5 = vector.extract_strided_slice %2 {offsets = [0, 33], sizes = [8, 1], strides = [1, 1]} : vector<16x34xf32> to vector<8x1xf32>
    %6 = tpu.transpose %5, [1, 0] : vector<8x1xf32> -> vector<1x8xf32>
    %7 = vector.broadcast %4 : vector<8x1xf32> to vector<8x8xf32>
    %8 = vector.broadcast %6 : vector<1x8xf32> to vector<8x8xf32>
    %9 = arith.addf %7, %8 : vector<8x8xf32>
    %cst_3 = arith.constant 0.000000e+00 : f32
    %10 = vector.broadcast %cst_3 : f32 to vector<8x8xf32>
    %11 = arith.cmpf ogt, %9, %10 : vector<8x8xf32>
    %cst_4 = arith.constant 2.000000e-01 : f32
    %12 = vector.broadcast %cst_4 : f32 to vector<8x8xf32>
    %13 = arith.mulf %12, %9 : vector<8x8xf32>
    %14 = arith.select %11, %9, %13 : vector<8x8xi1>, vector<8x8xf32>
    %c0_5 = arith.constant 0 : index
    %c0_6 = arith.constant 0 : index
    %c0_7 = arith.constant 0 : index
    %15 = vector.load %arg3[%c0_5, %c0_6, %c0_7] : memref<2x8x8xf32, #tpu.memory_space<vmem>>, vector<1x8x8xf32>
    %16 = vector.shape_cast %15 : vector<1x8x8xf32> to vector<8x8xf32>
    %cst_8 = arith.constant 0.000000e+00 : f32
    %17 = vector.broadcast %cst_8 : f32 to vector<8x8xf32>
    %18 = arith.cmpf ogt, %16, %17 : vector<8x8xf32>
    %cst_9 = arith.constant -9.99999995E+11 : f32
    %19 = vector.broadcast %cst_9 : f32 to vector<8x8xf32>
    %20 = arith.select %18, %14, %19 : vector<8x8xi1>, vector<8x8xf32>
    %cst_10 = arith.constant dense<0xFF800000> : vector<8xf32>
    %21 = vector.multi_reduction <maximumf>, %20, %cst_10 [1] : vector<8x8xf32> to vector<8xf32>
    %22 = vector.shape_cast %21 : vector<8xf32> to vector<8x1xf32>
    %23 = vector.broadcast %22 : vector<8x1xf32> to vector<8x8xf32>
    %24 = arith.subf %20, %23 : vector<8x8xf32>
    %25 = math.exp %24 : vector<8x8xf32>
    %cst_11 = arith.constant dense<0.000000e+00> : vector<8xf32>
    %26 = vector.multi_reduction <add>, %25, %cst_11 [1] : vector<8x8xf32> to vector<8xf32>
    %27 = vector.shape_cast %26 : vector<8xf32> to vector<8x1xf32>
    %28 = tpu.reciprocal %27 {approx = true} : vector<8x1xf32> -> vector<8x1xf32>
    %29 = arith.mulf %27, %28 : vector<8x1xf32>
    %cst_12 = arith.constant 2.000000e+00 : f32
    %30 = vector.broadcast %cst_12 : f32 to vector<8x1xf32>
    %31 = arith.subf %30, %29 : vector<8x1xf32>
    %32 = arith.mulf %28, %31 : vector<8x1xf32>
    %33 = vector.broadcast %32 : vector<8x1xf32> to vector<8x8xf32>
    %34 = arith.mulf %25, %33 : vector<8x8xf32>
    %cst_13 = arith.constant dense<0.000000e+00> : vector<8x32xf32>
    %35 = tpu.matmul %34, %3, %cst_13 {dimension_numbers = #tpu.dot_dimension_numbers<[1], [0], [0], [1], [0, 0, 1, 1], [], []>} : vector<8x8xf32>, vector<8x32xf32>, vector<8x32xf32> -> vector<8x32xf32>
    %cst_14 = arith.constant 0.000000e+00 : f32
    %36 = vector.broadcast %cst_14 : f32 to vector<8x32xf32>
    %37 = arith.cmpf ogt, %35, %36 : vector<8x32xf32>
    %cst_15 = arith.constant 0.000000e+00 : f32
    %38 = vector.broadcast %cst_15 : f32 to vector<8x32xf32>
    %39 = arith.minimumf %35, %38 : vector<8x32xf32>
    %40 = math.exp %39 : vector<8x32xf32>
    %cst_16 = arith.constant 1.000000e+00 : f32
    %41 = vector.broadcast %cst_16 : f32 to vector<8x32xf32>
    %42 = arith.subf %40, %41 : vector<8x32xf32>
    %43 = arith.select %37, %35, %42 : vector<8x32xi1>, vector<8x32xf32>
    %c0_17 = arith.constant 0 : index
    %c0_18 = arith.constant 0 : index
    %c0_19 = arith.constant 0 : index
    %44 = vector.load %arg4[%c0_17, %c0_18, %c0_19] : memref<2x8x32xf32, #tpu.memory_space<vmem>>, vector<1x8x32xf32>
    %45 = vector.shape_cast %44 : vector<1x8x32xf32> to vector<8x32xf32>
    %46 = vector.shape_cast %43 : vector<8x32xf32> to vector<1x8x32xf32>
    tpu.vector_store %arg4[%c0_17, %c0_18, %c0_19], %46 {strides = array<i32>} : memref<2x8x32xf32, #tpu.memory_space<vmem>>, vector<1x8x32xf32>,
    %47 = vector.extract_strided_slice %2 {offsets = [8, 0], sizes = [8, 32], strides = [1, 1]} : vector<16x34xf32> to vector<8x32xf32>
    %48 = vector.extract_strided_slice %2 {offsets = [8, 32], sizes = [8, 1], strides = [1, 1]} : vector<16x34xf32> to vector<8x1xf32>
    %49 = vector.extract_strided_slice %2 {offsets = [8, 33], sizes = [8, 1], strides = [1, 1]} : vector<16x34xf32> to vector<8x1xf32>
    %50 = tpu.transpose %49, [1, 0] : vector<8x1xf32> -> vector<1x8xf32>
    %51 = vector.broadcast %48 : vector<8x1xf32> to vector<8x8xf32>
    %52 = vector.broadcast %50 : vector<1x8xf32> to vector<8x8xf32>
    %53 = arith.addf %51, %52 : vector<8x8xf32>
    %cst_20 = arith.constant 0.000000e+00 : f32
    %54 = vector.broadcast %cst_20 : f32 to vector<8x8xf32>
    %55 = arith.cmpf ogt, %53, %54 : vector<8x8xf32>
    %cst_21 = arith.constant 2.000000e-01 : f32
    %56 = vector.broadcast %cst_21 : f32 to vector<8x8xf32>
    %57 = arith.mulf %56, %53 : vector<8x8xf32>
    %58 = arith.select %55, %53, %57 : vector<8x8xi1>, vector<8x8xf32>
    %c1 = arith.constant 1 : index
    %c0_22 = arith.constant 0 : index
    %c0_23 = arith.constant 0 : index
    %59 = vector.load %arg3[%c1, %c0_22, %c0_23] : memref<2x8x8xf32, #tpu.memory_space<vmem>>, vector<1x8x8xf32>
    %60 = vector.shape_cast %59 : vector<1x8x8xf32> to vector<8x8xf32>
    %cst_24 = arith.constant 0.000000e+00 : f32
    %61 = vector.broadcast %cst_24 : f32 to vector<8x8xf32>
    %62 = arith.cmpf ogt, %60, %61 : vector<8x8xf32>
    %cst_25 = arith.constant -9.99999995E+11 : f32
    %63 = vector.broadcast %cst_25 : f32 to vector<8x8xf32>
    %64 = arith.select %62, %58, %63 : vector<8x8xi1>, vector<8x8xf32>
    %cst_26 = arith.constant dense<0xFF800000> : vector<8xf32>
    %65 = vector.multi_reduction <maximumf>, %64, %cst_26 [1] : vector<8x8xf32> to vector<8xf32>
    %66 = vector.shape_cast %65 : vector<8xf32> to vector<8x1xf32>
    %67 = vector.broadcast %66 : vector<8x1xf32> to vector<8x8xf32>
    %68 = arith.subf %64, %67 : vector<8x8xf32>
    %69 = math.exp %68 : vector<8x8xf32>
    %cst_27 = arith.constant dense<0.000000e+00> : vector<8xf32>
    %70 = vector.multi_reduction <add>, %69, %cst_27 [1] : vector<8x8xf32> to vector<8xf32>
    %71 = vector.shape_cast %70 : vector<8xf32> to vector<8x1xf32>
    %72 = tpu.reciprocal %71 {approx = true} : vector<8x1xf32> -> vector<8x1xf32>
    %73 = arith.mulf %71, %72 : vector<8x1xf32>
    %cst_28 = arith.constant 2.000000e+00 : f32
    %74 = vector.broadcast %cst_28 : f32 to vector<8x1xf32>
    %75 = arith.subf %74, %73 : vector<8x1xf32>
    %76 = arith.mulf %72, %75 : vector<8x1xf32>
    %77 = vector.broadcast %76 : vector<8x1xf32> to vector<8x8xf32>
    %78 = arith.mulf %69, %77 : vector<8x8xf32>
    %cst_29 = arith.constant dense<0.000000e+00> : vector<8x32xf32>
    %79 = tpu.matmul %78, %47, %cst_29 {dimension_numbers = #tpu.dot_dimension_numbers<[1], [0], [0], [1], [0, 0, 1, 1], [], []>} : vector<8x8xf32>, vector<8x32xf32>, vector<8x32xf32> -> vector<8x32xf32>
    %cst_30 = arith.constant 0.000000e+00 : f32
    %80 = vector.broadcast %cst_30 : f32 to vector<8x32xf32>
    %81 = arith.cmpf ogt, %79, %80 : vector<8x32xf32>
    %cst_31 = arith.constant 0.000000e+00 : f32
    %82 = vector.broadcast %cst_31 : f32 to vector<8x32xf32>
    %83 = arith.minimumf %79, %82 : vector<8x32xf32>
    %84 = math.exp %83 : vector<8x32xf32>
    %cst_32 = arith.constant 1.000000e+00 : f32
    %85 = vector.broadcast %cst_32 : f32 to vector<8x32xf32>
    %86 = arith.subf %84, %85 : vector<8x32xf32>
    %87 = arith.select %81, %79, %86 : vector<8x32xi1>, vector<8x32xf32>
    %c1_33 = arith.constant 1 : index
    %c0_34 = arith.constant 0 : index
    %c0_35 = arith.constant 0 : index
    %88 = vector.load %arg4[%c1_33, %c0_34, %c0_35] : memref<2x8x32xf32, #tpu.memory_space<vmem>>, vector<1x8x32xf32>
    %89 = vector.shape_cast %88 : vector<1x8x32xf32> to vector<8x32xf32>
    %90 = vector.shape_cast %87 : vector<8x32xf32> to vector<1x8x32xf32>
    tpu.vector_store %arg4[%c1_33, %c0_34, %c0_35], %90 {strides = array<i32>} : memref<2x8x32xf32, #tpu.memory_space<vmem>>, vector<1x8x32xf32>,
    return
  }
  func.func @transform_0(%arg0: i32) -> (i32, i32) {
    %c0_i32 = arith.constant 0 : i32
    %c0_i32_0 = arith.constant 0 : i32
    return %arg0, %c0_i32 : i32, i32
  }
  func.func @transform_1(%arg0: i32) -> (i32, i32) {
    %c0_i32 = arith.constant 0 : i32
    %c0_i32_0 = arith.constant 0 : i32
    %c0_i32_1 = arith.constant 0 : i32
    return %c0_i32, %c0_i32_0 : i32, i32
  }
  func.func @transform_2(%arg0: i32) -> (i32, i32, i32) {
    %c0_i32 = arith.constant 0 : i32
    %c0_i32_0 = arith.constant 0 : i32
    %c0_i32_1 = arith.constant 0 : i32
    return %arg0, %c0_i32, %c0_i32_0 : i32, i32, i32
  }
  func.func @transform_3(%arg0: i32) -> (i32, i32, i32) {
    %c0_i32 = arith.constant 0 : i32
    %c0_i32_0 = arith.constant 0 : i32
    %c0_i32_1 = arith.constant 0 : i32
    return %arg0, %c0_i32, %c0_i32_0 : i32, i32, i32
  }
}

</mosaic_0001>

<bundles_post_ra>
// kernel: tpu_custom_call.1
= control target key start
LH: loop header
LB: loop body
LE: loop exit
PB: predicated region body
PF: predicated region fallthrough
CT: control target
= control target key end

     0   :  { %8 = vsyncpa [#allocation3], 0  ;;  %s995_s0 = inlined_call_operand.vmem [shape: f32[32,16], index: 0, kind: input, shape index: {}]   ;;  %s996_s1 = inlined_call_operand.vmem [shape: f32[16,34], index: 1, kind: input, shape index: {}]   ;;  %s997_s2 = inlined_call_operand.vmem [shape: f32[4,8,8], index: 2, kind: input, shape index: {}]   ;;  %s998_s3 = inlined_call_operand.hbm [shape: f32[4,8,32], index: 3, kind: output, shape index: {}]  }
   0x1   :  { %10 = vsyncpa [#allocation3 + $0x1], 0  ;;  %s864_s12 = smov 0   ;;  %s866_s13 = smov 0  }
   0x2   :  { %s868_s14 = smov 0   ;;  %s870_s15 = smov 0  }
   0x3 LB: > { %s885_s16 = sadd.s32 4294967295, %s835_s15   ;;  %s662_s17 = sadd.s32 4294967294, %s835_s15   ;;  %s835_s15 = sphi %s870_s15, %s1004_s15   ;;  %s831_s14 = sphi %s868_s14, %s1003_s14   ;;  %s827_s13 = sphi %s866_s13, %s1002_s13   ;;  %s823_s12 = sphi %s864_s12, %s1001_s12  }
   0x4   : > { %s889_s18 = sadd.s32 1, %s835_s15   ;;  %s96_s19 = sadd.s32 1, %s831_s14 }
   0x5   : > { %s93_s20 = ssub.s32 %s835_s15, %s889_s18  ;;  %p106_p0 = scmp.ne.s32.totalorder %s831_s14, %s827_s13 }
   0x6   : > { %p94_p1 = scmp.eq.s32.totalorder %s93_s20, 0  ;;  %p107_p2 = scmp.eq.s32.totalorder %s885_s16, 1 }
   0x7   : > { %p112_p3 = scmp.ne.s32.totalorder %s827_s13, %s823_s12  ;;  %p113_p4 = scmp.eq.s32.totalorder %s662_s17, 1 }
   0x8   : > { %s900_s21 = scalar_select %p94_p1, %s831_s14, %s96_s19  }
   0x9   : > { %p902_p5 = por %p107_p2, %p106_p0  ;;  %p906_p6 = por %p113_p4, %p112_p3 }
   0xa   : > { %p665_p7 = scmp.ge.s32.totalorder %s835_s15, 1  ;;  %p152_p8 = scmp.lt.s32.totalorder %s835_s15, 3 }
   0xc   : > { %p153_p9 = pnand %p665_p7, %p152_p8 }
   0xd   : > { %v196_v0 = vld [vmem:[%s996_s1] sm:$0xff] (!%p153_p9)  ;;  %v197_v1 = vld [vmem:[%s996_s1 + $0x8] sm:$0xff] (!%p153_p9)  ;;  %s667_s28 = sshll.u32 (!%p153_p9), %s885_s16, 1  ;;  %v837_v3 = vmov (!%p153_p9), 32   ;;  %vm198_vm0 = vcmask (!%p153_p9), 130048   ;;  %v838_v6 = vmov (!%p153_p9), 0.0   ;;  %v320_v11 = vlaneseq (!%p153_p9) }
   0xe   : > { %156 = sbr.rel (%p153_p9) target bundleno = 1060 (0x424), region = 32  ;;  %v710_v2 = vpack.c.bf16 (!%p153_p9), %v197_v1, %v196_v0  ;;  %p182_p10 = scmp.lt.s32.totalorder (!%p153_p9), %s667_s28, 3  ;;  %759 = vset.pattern.permute.xlu1 (!%p153_p9), %v837_v3  ;;  %700 = vmatprep.subr.mxu1 (!%p153_p9), %v838_v6  ;;  %vm331_vm3 = vcmask (!%p153_p9), 64512   ;;  %vm840_vm6 = vmmov (!%p153_p9), 0   ;;  %vm425_vm7 = vcmask (!%p153_p9), 261120  }
   0xf   : > { %s839_s6 = smov (!%p153_p9), 95   ;;  %v321_v12 = vshrl.u32 (!%p153_p9), %v320_v11, 7  ;;  %702 = vmatprep.mubr.msk.f32.mxu1 (!%p153_p9), %vm840_vm6, %v838_v6  ;;  %s178_s10 = sand.u32 (!%p153_p9), 1, %s827_s13  }
  0x10   : > { %711 = vmatprep.subr.bf16.mxu0 (!%p153_p9), %v710_v2  ;;  %s666_s11 = sshll.u32 (!%p153_p9), %s178_s10, 4  ;;  %s684_s20 = sshll.u32 (!%p153_p9), %s885_s16, 8 }
  0x11   : > { %713 = vmatpush3.bf16.msra.mxu0 (!%p153_p9), %v710_v2  ;;  %v322_v14 = vsub.s32 (!%p153_p9), 0, %v321_v12  ;;  %s180_s17 = scalar_lea.vmem (!%p153_p9), [#allocation2], %s666_s11  ;;  %s952_s26 = scalar_lea.hbm (!%p153_p9), %s998_s3, %s684_s20 }
  0x12   : > { %s588_s19 = sshll.u32 (!%p153_p9), %s180_s17, 4  ;;  %s954_s27 = scalar_lea.sflag (!%p153_p9), [#allocation3], %s178_s10  ;;  %s947_s19 = int_to_ptr.vmem [resolvable:$true] %s588_s19 }
  0x13   : > { %s841_s16 = smov (!%p153_p9), [#allocation2]  }
  0x15   : > { %s1006_s28 = smov (!%p182_p10, %s667_s28), 3 }
  0x16   : > { %s668_s29 = sshll.u32 %s1006_s28, 3  ;;  %s773_s28 = scalar_lea.vmem %s947_s19, 256 }
  0x17   : > { %s185_s5 = scalar_lea.vmem %s995_s0, %s668_s29  ;;  %s191_s9 = scalar_lea.vmem %s997_s2, %s668_s29 }
  0x18   : > { %v194_v4 = vld [vmem:[%s185_s5] sm:$0xff]  ;;  %v195_v5 = vld [vmem:[%s185_s5 + $0x8] sm:$0xff]  ;;  %p774_p11 = scmp.ne.s32.totalorder %s947_s19, %s773_s28  ;;  %s777_s29 = sshll.u32 %s841_s16, 4  ;;  %s778_s29 = int_to_ptr.vmem [resolvable:$false] %s777_s29 }
  0x19   : > { %697 = vmatprep.mubr.msk.f32.mxu0 %vm198_vm0, %v194_v4  ;;  %v328_v18 = vld [vmem:[%s191_s9] sm:$0xff]  ;;  %v675_v23 = vld [vmem:[%s191_s9 + $0x8] sm:$0xff]  ;;  %s779_s30 = scalar_lea.vmem %s778_s29, 512  ;;  %p780_p0 = scmp.lt.s32.totalorder %s947_s19, %s778_s29 }
  0x1a   : > { %698 = vmatmul.mubr.msk.f32.vlgmr.msra.gmra.mrb[0].mxu0 %vm198_vm0, %v195_v5  ;;  %vm329_vm2 = vcmp.gt.f32.partialorder %v328_v18, 0.0  ;;  %vm477_vm5 = vcmp.gt.f32.partialorder %v675_v23, 0.0  ;;  %p775_p12 = pnand %p774_p11, %p902_p5  ;;  %p781_p1 = scmp.lt.s32.totalorder %s779_s30, %s773_s28 }
  0x1c   : > { %p776_p13 = pneg %p775_p12  ;;  %p782_p2 = por %p781_p1, %p780_p0 }
  0x1e   : > { %p783_p3 = pnand %p782_p2, %p776_p13 }
  0xed   : > { %v926_v7 = vpop.f32.mrb[0].mxu0 }
  0xee   : > { %464 = vperm.xlu1 %759, %v926_v7   ;;  %v271_v8 = vpop.f32.mrb[1].mxu0 }
  0xef   : > { %281 = vrot.lane.b32.xlu0 %v271_v8, %s839_s6  ;;  %701 = vmatpush3.msra.mxu1 %v271_v8 }
  0xf0   : > { %705 = vmatprep.subr.mxu1 %v838_v6 }
  0xf2   : > { %317 = vperm.xlu1 %759, %v271_v8  }
  0xf3   : > { %428 = vrot.lane.b32.xlu0 %v926_v7, %s839_s6 }
 0x161   : > { %v282_v9 = vpop.permute.xlu0 %281 }
 0x162   : > { %284 = vxpose.xlu0.b32.start.end [1/1] (short) (narrow) %v282_v9, 8 }
 0x165   : > { %v429_v10 = vpop.permute.xlu0 %428 }
 0x166   : > { %431 = vxpose.xlu1.b32.start.end [1/1] (short) (narrow) %v429_v10, 8 }
 0x16d   : > { %v465_v13 = vpop.permute.xlu1 %464 }
 0x171   : > { %v318_v15 = vpop.permute.xlu1 %317 }
 0x18b   : > { %760 = vset.pattern.permute.xlu0 %v837_v3 }
 0x1e2   : > { %v300_v16 = vpop.trf.xlu0 }
 0x1e3   : > { %v323_v17 = vrot.slane %v300_v16, %v322_v14 }
 0x1e5   : > { %v324_v19 = vadd.f32 %v323_v17, %v318_v15 }
 0x1e6   : > { %v447_v20 = vpop.trf.xlu1 }
 0x1e7   : > { %v470_v21 = vrot.slane %v447_v20, %v322_v14  ;;  %vm325_vm1 = vcmp.gt.f32.partialorder %v324_v19, 0.0  ;;  %v326_v22 = vmul.f32 0.2, %v324_v19 }
 0x1e9   : > { %v471_v24 = vadd.f32 %v470_v21, %v465_v13  ;;  %v327_v25 = vsel %vm325_vm1, %v324_v19, %v326_v22 }
 0x1ea   : > { %v330_v26 = vsel %vm329_vm2, %v327_v25, -1e+12 }
 0x1eb   : > { %v332_v27 = vsel %vm331_vm3, %v330_v26, -inf  ;;  %vm472_vm4 = vcmp.gt.f32.partialorder %v471_v24, 0.0  ;;  %v473_v28 = vmul.f32 0.2, %v471_v24 }
 0x1ec   : > { %333 = vmax.xlane.f32.xlu0 %v332_v27 }
 0x1ed   : > { %v474_v29 = vsel %vm472_vm4, %v471_v24, %v473_v28 }
 0x1ee   : > { %v478_v30 = vsel %vm477_vm5, %v474_v29, -1e+12 }
 0x1ef   : > { %v479_v31 = vsel %vm331_vm3, %v478_v30, -inf }
 0x1f0   : > { %480 = vmax.xlane.f32.xlu1 %v479_v31 }
 0x279   : > { %v334_v32 = vpop.xlane.xlu0 %333 }
 0x27a   : > { %v335_v33 = vsub.f32 %v330_v26, %v334_v32 }
 0x27c   : > { %v336_v34 = vmul.f32 1.442695, %v335_v33 }
 0x27d   : > { %v481_v35 = vpop.xlane.xlu1 %480 }
 0x27e   : > { %761 = vpow2.f32 %v336_v34  ;;  %v482_v36 = vsub.f32 %v478_v30, %v481_v35 }
 0x280   : > { %v483_v37 = vmul.f32 1.442695, %v482_v36 }
 0x282   : > { %763 = vpow2.f32 %v483_v37 }
 0x288   : > { %v762_v38 = vpop.eup %761 }
 0x289   : > { %v338_v39 = vsel %vm331_vm3, %v762_v38, 0.0 }
 0x28a   : > { %339 = vadd.xlane.f32.xlu0 %v338_v39 }
 0x28c   : > { %v764_v40 = vpop.eup %763 }
 0x28d   : > { %v485_v41 = vsel %vm331_vm3, %v764_v40, 0.0 }
 0x28e   : > { %486 = vadd.xlane.f32.xlu0 %v485_v41 }
 0x317   : > { %v340_v42 = vpop.xlane.xlu0 %339 }
 0x318   : > { %765 = vrcp.f32 %v340_v42 }
 0x31b   : > { %v487_v43 = vpop.xlane.xlu0 %486 }
 0x31c   : > { %767 = vrcp.f32 %v487_v43 }
 0x322   : > { %v766_v44 = vpop.eup %765 }
 0x323   : > { %v342_v45 = vmul.f32 %v766_v44, %v340_v42 }
 0x325   : > { %v343_v46 = vsub.f32 2.0, %v342_v45 }
 0x326   : > { %v768_v47 = vpop.eup %767 }
 0x327   : > { %v344_v48 = vmul.f32 %v766_v44, %v343_v46  ;;  %v489_v49 = vmul.f32 %v768_v47, %v487_v43 }
 0x329   : > { %v345_v50 = vmul.f32 %v762_v38, %v344_v48  ;;  %v490_v51 = vsub.f32 2.0, %v489_v49 }
 0x32b   : > { %v491_v52 = vmul.f32 %v768_v47, %v490_v51  ;;  %703 = vmatmul.mubr.msk.f32.vlgmr.msra.gmra.mrb[0].mxu1 %vm331_vm3, %v345_v50 }
 0x32c   : > { %706 = vmatpush3.msra.mxu1 %v926_v7  ;;  %707 = vmatprep.mubr.msk.f32.mxu1 %vm840_vm6, %v838_v6 }
 0x32d   : > { %v492_v53 = vmul.f32 %v764_v40, %v491_v52 }
 0x32f   : > { %708 = vmatmul.mubr.msk.f32.vlgmr.msra.gmra.mrb[2].mxu1 %vm331_vm3, %v492_v53 }
 0x3fe   : > { %v415_v54 = vpop.f32.mrb[0].mxu1 }
 0x3ff   : > { %v420_v55 = vmin.f32 %v415_v54, 0.0  ;;  %v704_v56 = vpop.f32.mrb[1].mxu1  ;;  %vm419_vm8 = vcmp.gt.f32.partialorder %v415_v54, 0.0 }
 0x401   : > { %v421_v57 = vmul.f32 1.442695, %v420_v55 }
 0x402   : > { %v562_v58 = vpop.f32.mrb[2].mxu1 }
 0x403   : > { %769 = vpow2.f32 %v421_v57  ;;  %v567_v59 = vmin.f32 %v562_v58, 0.0  ;;  %v709_v60 = vpop.f32.mrb[3].mxu1  ;;  %vm566_vm9 = vcmp.gt.f32.partialorder %v562_v58, 0.0 }
 0x405   : > { %v568_v61 = vmul.f32 1.442695, %v567_v59 }
 0x407   : > { %771 = vpow2.f32 %v568_v61 }
 0x40d   : > { %v770_v62 = vpop.eup %769 }
 0x40e   : > { %v674_v63 = vadd.f32 -1.0, %v770_v62 }
 0x410   : > { %v424_v0 = vsel %vm419_vm8, %v415_v54, %v674_v63 }
 0x411   : > { %v772_v1 = vpop.eup %771  ;;  %426 = vst.msk [vmem:[%s180_s17] sm:$0xff] %vm425_vm7, %v424_v0 }
 0x412   : > { %v677_v2 = vadd.f32 -1.0, %v772_v1 }
 0x414   : > { %v571_v3 = vsel %vm566_vm9, %v562_v58, %v677_v2 }
 0x415   : > { %678 = vst.msk [vmem:[%s180_s17 + $0x8] sm:$0xff] %vm425_vm7, %v571_v3 }
 0x416   : > { %786 = shalt.err (!%p783_p3)
}
 0x417   : > { %s787_s4 = scalar_lea.hbm %s952_s26, 256  ;;  %s791_s7 = scalar_lea.hbm %s998_s3, 512 }
 0x418   : > { %p788_p4 = scmp.ne.s32.totalorder %s952_s26, %s787_s4  ;;  %p792_p9 = scmp.lt.u32.totalorder %s952_s26, %s998_s3 }
 0x419   : > { %p793_p10 = scmp.lt.u32.totalorder %s791_s7, %s787_s4  ;;  %p795_p12 = scmp.lt.u32.totalorder %s787_s4, %s952_s26 }
 0x41a   : > { %p789_p7 = pnand %p788_p4, %p902_p5 }
 0x41b   : > { %p794_p11 = por %p793_p10, %p792_p9 }
 0x41c   : > { %p790_p8 = pneg %p789_p7 }
 0x41d   : > { %p796_p13 = por %p795_p12, %p794_p11 }
 0x41f   : > { %p797_p0 = pnand %p796_p13, %p790_p8 }
 0x421   : > { %800 = shalt.err (!%p797_p0)
}
 0x422   : > { %s842_s10 = smov 128   ;;  %s843_s11 = smov 8  }
 0x423   : > { %714 = dma.vmem_to_hbm [thread:$0]  (%p902_p5), %s947_s19, 256, %s952_s26, %s954_s27, %s842_s10, %s842_s10, %s843_s11  }
 0x424 PF: > { %p720_p1 = scmp.ge.s32.totalorder %s835_s15, 2  ;;  %s603_s17 = sand.u32 1, %s823_s12  }
 0x425   : > { %s604_s20 = scalar_lea.sflag [#allocation3], %s603_s17 }
 0x426   : > { %p717_p2 = pnand %p720_p1, %p906_p6 }
 0x428   : > { %818 = dma.done.wait (!%p717_p2), %s604_s20, 256  }
 0x429   : > { %820 = vsyncadd (!%p717_p2), %s604_s20, 4294967040  ;;  %p13_p3 = scmp.ge.s32.totalorder %s889_s18, 4   ;;  %s1001_s12 = smov %s827_s13 }
 0x42a   : > { %s1002_s13 = smov %s831_s14  ;;  %s1003_s14 = smov %s900_s21 }
 0x42b   : > { %s1004_s15 = smov %s889_s18  ;;  %15 = sbr.rel (!%p13_p3) target bundleno = 3 (0x3), region = 72 }
 0x432   :  { %609 = vsyncpa [#allocation3], 1 }
 0x433   :  { %611 = vsyncpa [#allocation3 + $0x1], 1 }

</bundles_post_ra>
